<compile_context>
chip_gen: v7x
topology: tpu7x:2x2x1
jax: 0.10.0
libtpu: 0.0.40
codegen_flags: <defaults>
</compile_context>

<pallas_src>
import math
import functools

import jax
import jax.numpy as jnp
from jax.experimental import pallas as pl
from jax.experimental.pallas import tpu as pltpu


_VMEM_TILE_BUDGET = 12 * 1024 * 1024   # double-buffered per-step footprint target
_VMEM_LIMIT_BYTES = 32 * 1024 * 1024   # safe on v5e/v6e (128 MiB) and v7x (64 MiB)
_MAX_TILE_M = 2048


def _apply_activation(g, activation):
    """Static (trace-time) dispatch of the GLU gate activation."""
    if activation == "sigmoid":
        return jax.nn.sigmoid(g)
    elif activation in ("swish", "silu"):
        return g * jax.nn.sigmoid(g)
    elif activation == "tanh":
        return jnp.tanh(g)
    elif activation == "relu":
        return jnp.maximum(g, 0.0)
    elif activation == "gelu":
        # PyTorch nn.GELU() default is the exact (erf) formulation.
        return jax.nn.gelu(g, approximate=False)
    elif activation == "elu":
        return jax.nn.elu(g)
    elif activation == "softplus":
        return jax.nn.softplus(g)
    elif activation in ("sqrelu", "relu2"):
        r = jnp.maximum(g, 0.0)
        return r * r
    elif activation == "laplace":
        mu, sigma = 0.707107, 0.282095
        z = (g - mu) / (sigma * math.sqrt(2.0))
        return 0.5 * (1.0 + jax.lax.erf(z))
    elif activation in (None, "id", "identity", "linear", "none"):
        return g
    else:
        # TODO(synk): ModReLU gate (parametric learned bias) not wired into this
        # static dispatch.
        raise NotImplementedError(activation)


def _glu_kernel_split(x_ref, g_ref, o_ref, *, activation):
    # value / gate arrive as separate lane-dense VMEM tiles: no in-kernel split.
    o_ref[...] = (x_ref[...] * _apply_activation(g_ref[...], activation)).astype(
        o_ref.dtype
    )


def _glu_kernel_fused(x_ref, o_ref, *, h_cols, activation):
    # Fallback when the half-width is not a multiple of 128 lanes: take the full
    # row (block last dim == full array dim, always legal) and split in-kernel.
    x = x_ref[:, :h_cols]
    g = x_ref[:, h_cols:]
    o_ref[...] = (x * _apply_activation(g, activation)).astype(o_ref.dtype)


def _round_up(x, mult):
    return ((x + mult - 1) // mult) * mult


def _cdiv(a, b):
    return -(-a // b)


def _choose_tile_m(m, bytes_per_row_in_vmem, itemsize):
    # sublane granularity depends on dtype packing: 8 (f32), 16 (bf16), 32 (int8)
    sublane = max(8, 32 // max(1, itemsize))
    # double-buffered per-step VMEM footprint ~= 2 * bytes_per_row_in_vmem * tile_m
    tile_m = max(sublane, _VMEM_TILE_BUDGET // max(1, 2 * bytes_per_row_in_vmem))
    tile_m = min(tile_m, _MAX_TILE_M)
    tile_m = max((tile_m // sublane) * sublane, sublane)
    # never larger than the (sublane-rounded) row count
    tile_m = min(tile_m, _round_up(m, sublane))
    return tile_m, sublane


def glu(x, dim=-1, activation="sigmoid"):
    """Pallas GLU: split `x` along `dim`; return value_half * act(gate_half)."""
    ndim = x.ndim
    dim = dim % ndim
    two_h = x.shape[dim]
    assert two_h % 2 == 0, "split axis must have even size"
    half = two_h // 2

    lead = x.shape[:dim]
    trail = x.shape[dim + 1:]
    m = int(math.prod(lead))
    inner = int(math.prod(trail))
    h_cols = half * inner          # columns of the value (and the gate) half
    total_cols = two_h * inner

    x2d = x.reshape(m, total_cols)  # metadata-only reshape: no extra HBM pass
    itemsize = jnp.dtype(x.dtype).itemsize
    out_shape = jax.ShapeDtypeStruct((m, h_cols), x.dtype)

    if h_cols % 128 == 0:
        # Lane-dense fast path: 2-D grid (row tiles, lane tiles), two BlockSpecs
        # on the same array select the value half and the gate half.
        tile_n = 128
        for cand in (1024, 512, 256):
            if h_cols % cand == 0:
                tile_n = cand
                break
        # per-step rows held in VMEM: value + gate + out tiles
        tile_m, sublane = _choose_tile_m(m, 3 * tile_n * itemsize, itemsize)
        n_col_blocks = h_cols // tile_n
        n_row_blocks = _cdiv(m, tile_m)
        if n_row_blocks * n_col_blocks < 2 and m >= 2 * sublane:
            # keep >= 2 grid steps so both v7x TensorCores get work
            tile_m = _round_up(_cdiv(m, 2), sublane)
            n_row_blocks = _cdiv(m, tile_m)

        gate_off = h_cols // tile_n
        kernel = functools.partial(_glu_kernel_split, activation=activation)
        out2d = pl.pallas_call(
            kernel,
            out_shape=out_shape,
            grid_spec=pltpu.PrefetchScalarGridSpec(
                num_scalar_prefetch=0,
                grid=(n_row_blocks, n_col_blocks),
                in_specs=[
                    pl.BlockSpec((tile_m, tile_n), lambda i, j: (i, j)),
                    pl.BlockSpec((tile_m, tile_n), lambda i, j: (i, j + gate_off)),
                ],
                out_specs=pl.BlockSpec((tile_m, tile_n), lambda i, j: (i, j)),
            ),
            compiler_params=pltpu.CompilerParams(
                dimension_semantics=("parallel", "parallel"),
                vmem_limit_bytes=_VMEM_LIMIT_BYTES,
            ),
        )(x2d, x2d)
    else:
        # Half-width not lane aligned: full-row blocks + in-kernel split.
        tile_m, _ = _choose_tile_m(m, 3 * h_cols * itemsize, itemsize)
        n_row_blocks = _cdiv(m, tile_m)
        kernel = functools.partial(
            _glu_kernel_fused, h_cols=h_cols, activation=activation
        )
        out2d = pl.pallas_call(
            kernel,
            out_shape=out_shape,
            grid_spec=pltpu.PrefetchScalarGridSpec(
                num_scalar_prefetch=0,
                grid=(n_row_blocks,),
                in_specs=[pl.BlockSpec((tile_m, total_cols), lambda i: (i, 0))],
                out_specs=pl.BlockSpec((tile_m, h_cols), lambda i: (i, 0)),
            ),
            compiler_params=pltpu.CompilerParams(
                dimension_semantics=("parallel",),
                vmem_limit_bytes=_VMEM_LIMIT_BYTES,
            ),
        )(x2d)

    return out2d.reshape(*lead, half, *trail)


if __name__ == "__main__":
    key = jax.random.PRNGKey(0)
    # batch=2, seq=8, hidden=256 (GLU splits hidden into 2x128 along dim=-1)
    x = jax.random.normal(key, (2, 8, 256), dtype=jnp.float32)

    # Default GLU: dim=-1, sigmoid gate.
    out = jax.block_until_ready(glu(x, dim=-1, activation="sigmoid"))
    half = x.shape[-1] // 2
    ref = x[..., :half] * jax.nn.sigmoid(x[..., half:])
    assert out.shape == ref.shape, (out.shape, ref.shape)
    assert jnp.allclose(out, ref, atol=1e-5, rtol=1e-5), float(
        jnp.max(jnp.abs(out - ref))
    )

    # Split along an interior dim (handled with free reshapes — no transpose).
    out1 = jax.block_until_ready(glu(x, dim=1, activation="silu"))
    h1 = x.shape[1] // 2
    g1 = x[:, h1:]
    ref1 = x[:, :h1] * (g1 * jax.nn.sigmoid(g1))
    assert out1.shape == ref1.shape, (out1.shape, ref1.shape)
    assert jnp.allclose(out1, ref1, atol=1e-5, rtol=1e-5), float(
        jnp.max(jnp.abs(out1 - ref1))
    )

    print("KERNEL_OK")
</pallas_src>

<mosaic_0001>
module attributes {stable_mosaic.version = 11 : i64} {
  func.func @_glu_kernel_split(%arg0: i32, %arg1: i32, %arg2: memref<8x128xf32, #tpu.memory_space<vmem>>, %arg3: memref<8x128xf32, #tpu.memory_space<vmem>>, %arg4: memref<8x128xf32, #tpu.memory_space<vmem>>) attributes {dimension_semantics = [#tpu.dimension_semantics<parallel>, #tpu.dimension_semantics<parallel>], iteration_bounds = array<i64: 2, 1>, scalar_prefetch = 0 : i64, scratch_operands = 0 : i64, tpu.core_type = #tpu.core_type<tc>, window_params = [{transform_indices = @transform_0, window_bounds = array<i64: 8, 128>}, {transform_indices = @transform_1, window_bounds = array<i64: 8, 128>}, {transform_indices = @transform_2, window_bounds = array<i64: 8, 128>}]} {
    %c0 = arith.constant 0 : index
    %c0_0 = arith.constant 0 : index
    %0 = vector.load %arg2[%c0, %c0_0] : memref<8x128xf32, #tpu.memory_space<vmem>>, vector<8x128xf32>
    %c0_1 = arith.constant 0 : index
    %c0_2 = arith.constant 0 : index
    %1 = vector.load %arg3[%c0_1, %c0_2] : memref<8x128xf32, #tpu.memory_space<vmem>>, vector<8x128xf32>
    %2 = arith.negf %1 : vector<8x128xf32>
    %3 = math.exp %2 : vector<8x128xf32>
    %cst = arith.constant 1.000000e+00 : f32
    %4 = vector.broadcast %cst : f32 to vector<8x128xf32>
    %5 = arith.addf %4, %3 : vector<8x128xf32>
    %6 = arith.divf %4, %5 : vector<8x128xf32>
    %7 = arith.mulf %0, %6 : vector<8x128xf32>
    %c0_3 = arith.constant 0 : index
    %c0_4 = arith.constant 0 : index
    %8 = vector.load %arg4[%c0_3, %c0_4] : memref<8x128xf32, #tpu.memory_space<vmem>>, vector<8x128xf32>
    tpu.vector_store %arg4[%c0_3, %c0_4], %7 {strides = array<i32>} : memref<8x128xf32, #tpu.memory_space<vmem>>, vector<8x128xf32>,
    return
  }
  func.func @transform_0(%arg0: i32, %arg1: i32) -> (i32, i32) {
    %c0_i32 = arith.constant 0 : i32
    return %arg0, %arg1 : i32, i32
  }
  func.func @transform_1(%arg0: i32, %arg1: i32) -> (i32, i32) {
    %c1_i32 = arith.constant 1 : i32
    %0 = arith.addi %arg1, %c1_i32 : i32
    %c0_i32 = arith.constant 0 : i32
    return %arg0, %0 : i32, i32
  }
  func.func @transform_2(%arg0: i32, %arg1: i32) -> (i32, i32) {
    %c0_i32 = arith.constant 0 : i32
    return %arg0, %arg1 : i32, i32
  }
}

</mosaic_0001>

<bundles_post_ra>
// kernel: tpu_custom_call.1
= control target key start
LH: loop header
LB: loop body
LE: loop exit
PB: predicated region body
PF: predicated region fallthrough
CT: control target
= control target key end

     0   :  { %7 = vsyncpa [#allocation3], 0  ;;  %s832_s0 = inlined_call_operand.hbm [shape: f32[16,256], index: 0, kind: input, shape index: {}]   ;;  %s833_s1 = inlined_call_operand.hbm [shape: f32[16,256], index: 1, kind: input, shape index: {}]   ;;  %s834_s2 = inlined_call_operand.hbm [shape: f32[16,128], index: 2, kind: output, shape index: {}]  }
   0x1   :  { %9 = vsyncpa [#allocation3 + $0x1], 0 }
   0x2   :  { %10 = vsyncpa [#allocation6], 0 }
   0x3   :  { %12 = vsyncpa [#allocation6 + $0x1], 0 }
   0x4   :  { %13 = vsyncpa [#allocation4], 0 }
   0x5   :  { %15 = vsyncpa [#allocation4 + $0x1], 0  ;;  %s613_s9 = smov 0   ;;  %s615_s10 = smov 0  }
   0x6   :  { %s617_s11 = smov 0   ;;  %s619_s12 = smov 0  }
   0x7   :  { %s621_s13 = smov 0   ;;  %s623_s14 = smov 0  }
   0x8 LB: > { %s354_s15 = sadd.s32 4294967295, %s593_s14   ;;  %s355_s16 = sadd.s32 4294967294, %s593_s14   ;;  %s593_s14 = sphi %s623_s14, %s21_s14   ;;  %s589_s13 = sphi %s621_s13, %s854_s13   ;;  %s585_s12 = sphi %s619_s12, %s853_s12   ;;  %s581_s11 = sphi %s617_s11, %s852_s11   ;;  %s577_s10 = sphi %s615_s10, %s851_s10   ;;  %s573_s9 = sphi %s613_s9, %s850_s9  }
   0x9   : > { %s33_s17 = sadd.s32 1, %s589_s13  ;;  %s42_s18 = sadd.s32 1, %s581_s11 }
   0xa   : > { %p35_p0 = scmp.ge.s32.totalorder %s33_s17, 2  ;;  %p49_p1 = scmp.ne.s32.totalorder %s581_s11, %s577_s10 }
   0xb   : > { %p50_p2 = scmp.eq.s32.totalorder %s593_s14, 0  ;;  %p55_p3 = scmp.ne.s32.totalorder %s577_s10, %s573_s9 }
   0xc   : > { %s856_s17 = smov (%p35_p0, %s33_s17), 0  ;;  %p56_p5 = scmp.eq.s32.totalorder %s354_s15, 0 }
   0xd   : > { %p654_p4 = por %p50_p2, %p49_p1  ;;  %s37_s20 = ssub.s32 %s589_s13, %s856_s17 }
   0xe   : > { %p111_p6 = scmp.eq.s32.totalorder %s354_s15, 1  ;;  %p40_p7 = scmp.eq.s32.totalorder %s37_s20, 0 }
   0xf   : > { %p660_p8 = por %p56_p5, %p55_p3  ;;  %p117_p10 = scmp.eq.s32.totalorder %s355_s16, 1 }
  0x10   : > { %p664_p9 = por %p111_p6, %p49_p1  ;;  %p392_p13 = scmp.lt.s32.totalorder %s593_s14, 2 }
  0x11   : > { %s838_s21 = scalar_select %p660_p8, 1, 0 }
  0x12   : > { %s839_s22 = scalar_select %p664_p9, 1, 0 }
  0x13   : > { %s669_s23 = scalar_select %p40_p7, %s581_s11, %s42_s18  }
  0x14   : > { %p671_p11 = por %p117_p10, %p55_p3  ;;  %s678_s25 = sand.u32 1, %s581_s11  }
  0x15   : > { %s358_s26 = sshll.u32 %s678_s25, 3  ;;  %s373_s27 = sshll.u32 %s589_s13, 8 }
  0x16   : > { %s840_s24 = scalar_select %p671_p11, 1, 0 }
  0x17   : > { %s687_s30 = scalar_lea.hbm %s832_s0, %s373_s27  ;;  %s141_s3 = scalar_lea.vmem [#allocation2], %s358_s26 }
  0x18   : > { %s150_s4 = sshll.u32 %s141_s3, 4  ;;  %p695_p0 = pnand %p392_p13, %p654_p4  ;;  %s691_s4 = int_to_ptr.vmem [resolvable:$true] %s150_s4 }
  0x19   : > { %s138_s6 = scalar_lea.sflag [#allocation3], %s678_s25  ;;  %s446_s7 = scalar_lea.hbm %s687_s30, 128 }
  0x1a   : > { %p447_p3 = scmp.ne.s32.totalorder %s687_s30, %s446_s7  ;;  %p448_p5 = pneg %p695_p0 }
  0x1b   : > { %s451_s16 = scalar_lea.hbm %s832_s0, 512  ;;  %p452_p4 = scmp.lt.u32.totalorder %s687_s30, %s832_s0 }
  0x1c   : > { %p449_p6 = pnand %p448_p5, %p447_p3  ;;  %p453_p10 = scmp.lt.u32.totalorder %s451_s16, %s446_s7 }
  0x1d   : > { %p455_p12 = scmp.lt.u32.totalorder %s446_s7, %s687_s30 }
  0x1e   : > { %p450_p7 = pneg %p449_p6  ;;  %p454_p13 = por %p453_p10, %p452_p4 }
  0x20   : > { %p456_p1 = por %p455_p12, %p454_p13 }
  0x22   : > { %p457_p2 = pnand %p456_p1, %p450_p7 }
  0x24   : > { %460 = shalt.err (!%p457_p2)
}
  0x25   : > { %s461_s20 = scalar_lea.vmem %s691_s4, 128  ;;  %s595_s28 = smov [#allocation2]  }
  0x26   : > { %p462_p3 = scmp.ne.s32.totalorder %s691_s4, %s461_s20  ;;  %s466_s29 = sshll.u32 %s595_s28, 4  ;;  %s467_s29 = int_to_ptr.vmem [resolvable:$false] %s466_s29 }
  0x27   : > { %s468_s3 = scalar_lea.vmem %s467_s29, 256  ;;  %p469_p9 = scmp.lt.s32.totalorder %s691_s4, %s467_s29 }
  0x28   : > { %p464_p6 = pnand %p462_p3, %p448_p5  ;;  %p470_p4 = scmp.lt.s32.totalorder %s468_s3, %s461_s20 }
  0x2a   : > { %p465_p11 = pneg %p464_p6  ;;  %p471_p10 = por %p470_p4, %p469_p9 }
  0x2c   : > { %p472_p12 = pnand %p471_p10, %p465_p11 }
  0x2e   : > { %475 = shalt.err (!%p472_p12)
}
  0x2f   : > { %384 = dma.hbm_to_vmem [thread:$0]  (!%p695_p0), %s687_s30, 128, %s691_s4, %s138_s6  }
  0x30   : > { %p842_p1 = scmp.lt.s32.totalorder %s593_s14, 3  ;;  %p843_p2 = scmp.ge.s32.totalorder %s593_s14, 1 }
  0x31   : > { %s287_s16 = scalar_lea.hbm %s833_s1, %s373_s27  ;;  %s161_s18 = scalar_lea.vmem [#allocation5], %s358_s26 }
  0x32   : > { %p731_p7 = pnand %p843_p2, %p842_p1  ;;  %s171_s19 = sshll.u32 %s161_s18, 4  ;;  %s172_s19 = int_to_ptr.vmem [resolvable:$true] %s171_s19 }
  0x33   : > { %s742_s20 = scalar_lea.hbm %s287_s16, 128  ;;  %s158_s30 = scalar_lea.sflag [#allocation6], %s678_s25 }
  0x34   : > { %s844_s7 = scalar_select %p731_p7, 1, 0 }
  0x35   : > { %s506_s4 = scalar_lea.hbm %s287_s16, 256  ;;  %s481_s27 = scalar_lea.hbm %s833_s1, 512 }
  0x36   : > { %p477_p9 = scmp.ne.s32.totalorder %s742_s20, %s506_s4  ;;  %p482_p3 = scmp.lt.u32.totalorder %s742_s20, %s833_s1 }
  0x37   : > { %p483_p6 = scmp.lt.u32.totalorder %s481_s27, %s506_s4  ;;  %p485_p10 = scmp.lt.u32.totalorder %s506_s4, %s742_s20 }
  0x38   : > { %p479_p11 = pnand %p477_p9, %p448_p5 }
  0x39   : > { %p484_p4 = por %p483_p6, %p482_p3 }
  0x3a   : > { %p480_p13 = pneg %p479_p11 }
  0x3b   : > { %p486_p12 = por %p485_p10, %p484_p4 }
  0x3d   : > { %p487_p1 = pnand %p486_p12, %p480_p13 }
  0x3f   : > { %490 = shalt.err (!%p487_p1)
}
  0x40   : > { %s491_s25 = scalar_lea.vmem %s172_s19, 128  ;;  %s596_s3 = smov [#allocation5]  }
  0x41   : > { %p492_p2 = scmp.ne.s32.totalorder %s172_s19, %s491_s25  ;;  %s496_s8 = sshll.u32 %s596_s3, 4  ;;  %s497_s8 = int_to_ptr.vmem [resolvable:$false] %s496_s8 }
  0x42   : > { %s498_s15 = scalar_lea.vmem %s497_s8, 256  ;;  %p499_p8 = scmp.lt.s32.totalorder %s172_s19, %s497_s8 }
  0x43   : > { %p494_p9 = pnand %p492_p2, %p448_p5  ;;  %p500_p7 = scmp.lt.s32.totalorder %s498_s15, %s491_s25 }
  0x45   : > { %p495_p11 = pneg %p494_p9  ;;  %p501_p3 = por %p500_p7, %p499_p8 }
  0x47   : > { %p502_p6 = pnand %p501_p3, %p495_p11 }
  0x49   : > { %505 = shalt.err (!%p502_p6)
}
  0x4a   : > { %387 = dma.hbm_to_vmem [thread:$0]  (!%p695_p0), %s742_s20, 128, %s172_s19, %s158_s30  }
  0x4b   : > { %p845_p13 = scmp.ne.s32.totalorder %s844_s7, 0 }
  0x4c   : > { %s766_s16 = sand.u32 (!%p845_p13), 1, %s577_s10   ;;  %p846_p5 = scmp.ne.s32.totalorder (!%p845_p13), %s838_s21, 0 }
  0x4d   : > { %180 = sbr.rel (%p845_p13) target bundleno = 130 (0x82), region = 28  ;;  %s365_s18 = sshll.u32 (!%p845_p13), %s766_s16, 3 }
  0x4e   : > { %s183_s4 = scalar_lea.sflag (!%p845_p13), [#allocation3], %s766_s16  ;;  %s186_s6 = scalar_lea.vmem (!%p845_p13), [#allocation2], %s365_s18 }
  0x54   : > { %560 = dma.done.wait (%p846_p5), %s183_s4, 128  }
  0x55   : > { %562 = vsyncadd (%p846_p5), %s183_s4, 4294967168  ;;  %s192_s5 = scalar_lea.sflag [#allocation6], %s766_s16  ;;  %s195_s19 = scalar_lea.vmem [#allocation5], %s365_s18 }
  0x56   : > { %564 = dma.done.wait (%p846_p5), %s192_s5, 128  }
  0x57   : > { %566 = vsyncadd (%p846_p5), %s192_s5, 4294967168  ;;  %v223_v0 = vld [vmem:[%s195_s19] sm:$0xff]  ;;  %v222_v4 = vld [vmem:[%s186_s6] sm:$0xff]  ;;  %s220_s7 = scalar_lea.vmem [#allocation7], %s365_s18  ;;  %s370_s30 = sshll.u32 %s585_s12, 7 }
  0x58   : > { %v368_v1 = vmul.f32 -1.442695, %v223_v0  ;;  %s247_s20 = sshll.u32 %s220_s7, 4  ;;  %s785_s27 = scalar_lea.hbm %s834_s2, %s370_s30  ;;  %s780_s20 = int_to_ptr.vmem [resolvable:$true] %s247_s20 }
  0x59   : > { %s233_s29 = scalar_lea.sflag [#allocation4], %s766_s16  ;;  %s507_s26 = scalar_lea.vmem %s780_s20, 128 }
  0x5a   : > { %442 = vpow2.f32 %v368_v1  ;;  %p508_p8 = scmp.ne.s32.totalorder %s780_s20, %s507_s26  ;;  %p847_p0 = scmp.ne.s32.totalorder %s839_s22, 0 }
  0x5b   : > { %s597_s12 = smov [#allocation7]  }
  0x5c   : > { %p509_p7 = pnand %p508_p8, %p847_p0  ;;  %s511_s25 = sshll.u32 %s597_s12, 4  ;;  %s512_s25 = int_to_ptr.vmem [resolvable:$false] %s511_s25 }
  0x5d   : > { %s513_s3 = scalar_lea.vmem %s512_s25, 256  ;;  %p514_p10 = scmp.lt.s32.totalorder %s780_s20, %s512_s25 }
  0x5e   : > { %p510_p4 = pneg %p509_p7  ;;  %p515_p12 = scmp.lt.s32.totalorder %s513_s3, %s507_s26 }
  0x60   : > { %p516_p1 = por %p515_p12, %p514_p10 }
  0x62   : > { %p517_p2 = pnand %p516_p1, %p510_p4 }
  0x64   : > { %v443_v2 = vpop.eup %442 }
  0x65   : > { %v227_v3 = vadd.f32 1.0, %v443_v2 }
  0x67   : > { %444 = vrcp.f32 %v227_v3 }
  0x71   : > { %v445_v5 = vpop.eup %444 }
  0x72   : > { %v230_v6 = vmul.f32 %v445_v5, %v222_v4 }
  0x74   : > { %231 = vst [vmem:[%s220_s7] sm:$0xff] %v230_v6 }
  0x75   : > { %520 = shalt.err (!%p517_p2)
}
  0x76   : > { %s521_s8 = scalar_lea.hbm %s785_s27, 128  ;;  %s525_s18 = scalar_lea.hbm %s834_s2, 256 }
  0x77   : > { %p522_p9 = scmp.ne.s32.totalorder %s785_s27, %s521_s8  ;;  %p526_p6 = scmp.lt.u32.totalorder %s785_s27, %s834_s2 }
  0x78   : > { %p527_p13 = scmp.lt.u32.totalorder %s525_s18, %s521_s8  ;;  %p529_p8 = scmp.lt.u32.totalorder %s521_s8, %s785_s27 }
  0x79   : > { %p523_p11 = pnand %p522_p9, %p847_p0 }
  0x7a   : > { %p528_p5 = por %p527_p13, %p526_p6 }
  0x7b   : > { %p524_p3 = pneg %p523_p11 }
  0x7c   : > { %p530_p7 = por %p529_p8, %p528_p5 }
  0x7e   : > { %p531_p4 = pnand %p530_p7, %p524_p3 }
  0x80   : > { %534 = shalt.err (!%p531_p4)
}
  0x81   : > { %379 = dma.vmem_to_hbm [thread:$0]  (%p847_p0), %s780_s20, 128, %s785_s27, %s233_s29  }
  0x82 PF: > { %s259_s5 = sand.u32 1, %s573_s9   ;;  %p848_p10 = scmp.ne.s32.totalorder %s840_s24, 0 }
  0x83   : > { %p849_p12 = scmp.ge.s32.totalorder %s593_s14, 2  ;;  %s260_s19 = scalar_lea.sflag [#allocation4], %s259_s5 }
  0x85   : > { %p389_p1 = pnand %p849_p12, %p848_p10 }
  0x87   : > { %568 = dma.done.wait (!%p389_p1), %s260_s19, 128  }
  0x88   : > { %570 = vsyncadd (!%p389_p1), %s260_s19, 4294967168  ;;  %s21_s14 = sadd.s32 1, %s593_s14   ;;  %s850_s9 = smov %s577_s10 }
  0x89   : > { %p18_p2 = scmp.ge.s32.totalorder %s21_s14, 4   ;;  %s851_s10 = smov %s581_s11 }
  0x8a   : > { %s852_s11 = smov %s669_s23  ;;  %s853_s12 = smov %s589_s13 }
  0x8b   : > { %s854_s13 = smov %s856_s17  ;;  %20 = sbr.rel (!%p18_p2) target bundleno = 8 (0x8), region = 86 }
  0x92   :  { %265 = vsyncpa [#allocation3], 1 }
  0x93   :  { %267 = vsyncpa [#allocation3 + $0x1], 1 }
  0x94   :  { %268 = vsyncpa [#allocation6], 1 }
  0x95   :  { %270 = vsyncpa [#allocation6 + $0x1], 1 }
  0x96   :  { %271 = vsyncpa [#allocation4], 1 }
  0x97   :  { %273 = vsyncpa [#allocation4 + $0x1], 1 }

</bundles_post_ra>
